<compile_context>
chip_gen: v6e
topology: v6e:2x2x1
jax: 0.10.0
libtpu: 0.0.40
codegen_flags: <defaults>
</compile_context>

<pallas_src>
import functools
import math

import jax
import jax.numpy as jnp
import numpy as np
from jax import lax
from jax.experimental import pallas as pl
from jax.experimental.pallas import tpu as pltpu


# ------------------------------ globals / helpers ----------------------------

_COMPUTE_DTYPE = jnp.bfloat16                                  # MXU-native input dtype
_MASK_VALUE = -0.7 * float(np.finfo(np.float32).max)           # finite "minus infinity"
_VMEM_LIMIT = 48 * 1024 * 1024                                 # headroom on v7x (64 MiB/core)


def _pick_tile(dim: int, preferred: int, align: int) -> int:
    """Largest tile <= preferred that is a multiple of `align` and divides `dim`.

    Falls back to the full dimension only when the dim is already small (<= preferred)
    or when no aligned divisor exists (full dims are always legal block shapes).
    """
    if dim <= preferred:
        return dim
    t = (preferred // align) * align
    while t >= align:
        if dim % t == 0:
            return t
        t -= align
    # TODO(synk): pad the array (or mask edge tiles) instead of using a full-dim tile here.
    return dim


# --------------------------- tiled linear kernel -----------------------------


def _linear_kernel(x_ref, w_ref, b_ref, o_ref, acc_ref):
    # x: (tm, tk) bf16, w: (tn, tk) bf16 [nn.Linear layout], b: (1, tn) f32,
    # o: (tm, tn) out_dtype, acc: (tm, tn) f32.
    @pl.when(pl.program_id(2) == 0)
    def _():
        acc_ref[...] = jnp.zeros_like(acc_ref)

    # NT matmul (contract last dims of both) -> no weight transpose, bf16 MXU, f32 acc.
    acc_ref[...] += lax.dot_general(
        x_ref[...], w_ref[...],
        dimension_numbers=(((1,), (1,)), ((), ())),
        preferred_element_type=jnp.float32,
    )

    @pl.when(pl.program_id(2) == pl.num_programs(2) - 1)
    def _():
        o_ref[...] = (acc_ref[...] + b_ref[...]).astype(o_ref.dtype)


def pallas_linear(x2d, w, b, out_dtype=None):
    """x2d: (M, Din); w: (Dout, Din); b: (Dout,) -> (M, Dout). Matches nn.Linear."""
    M, Din = x2d.shape
    Dout = w.shape[0]
    out_dtype = out_dtype if out_dtype is not None else x2d.dtype

    xc = x2d.astype(_COMPUTE_DTYPE)
    wc = w.astype(_COMPUTE_DTYPE)
    b2 = b.astype(jnp.float32).reshape(1, Dout)

    tm = _pick_tile(M, 512, 8)       # rows per step (grow further on v5e/v6e 128 MiB VMEM)
    tn = _pick_tile(Dout, 256, 128)  # MXU-native output width on v6e/v7x
    tk = _pick_tile(Din, 256, 128)   # contraction depth per step
    grid = (M // tm, Dout // tn, Din // tk)

    return pl.pallas_call(
        _linear_kernel,
        out_shape=jax.ShapeDtypeStruct((M, Dout), out_dtype),
        grid=grid,
        in_specs=[
            pl.BlockSpec((tm, tk), lambda i, j, k: (i, k)),
            pl.BlockSpec((tn, tk), lambda i, j, k: (j, k)),
            pl.BlockSpec((1, tn), lambda i, j, k: (0, j)),
        ],
        out_specs=pl.BlockSpec((tm, tn), lambda i, j, k: (i, j)),
        scratch_shapes=[pltpu.VMEM((tm, tn), jnp.float32)],
        compiler_params=pltpu.CompilerParams(
            dimension_semantics=("parallel", "parallel", "arbitrary"),
            vmem_limit_bytes=_VMEM_LIMIT,
        ),
    )(xc, wc, b2)


# ------------------ causal multi-head attention (flash-style) ----------------


def _mha_flash_kernel(q_ref, k_ref, v_ref, o_ref, m_sc, l_sc, acc_sc, *, nheads, e_head):
    # One batch element, all heads, one (query-tile, kv-tile) pair per grid step.
    # q: (1, tq, E_total) bf16 [already scaled by 1/sqrt(e_head) via folded weights]
    # k, v: (1, tkv, E_total) bf16; o: (1, tq, E_total)
    # Scratch (persist across the kv grid axis):
    #   m_sc, l_sc: (tq, nheads) f32;  acc_sc: (tq, E_total) f32.
    qi = pl.program_id(1)
    ki = pl.program_id(2)
    tq = q_ref.shape[1]
    tkv = k_ref.shape[1]

    @pl.when(ki == 0)
    def _():
        m_sc[...] = jnp.full_like(m_sc, _MASK_VALUE)
        l_sc[...] = jnp.zeros_like(l_sc)
        acc_sc[...] = jnp.zeros_like(acc_sc)

    q_end = (qi + 1) * tq - 1   # last absolute query row of this tile
    kv_start = ki * tkv         # first absolute key column of this block

    # Causal block skip: block entirely above the diagonal contributes nothing.
    @pl.when(kv_start <= q_end)
    def _():
        q = q_ref[0]  # (tq, E_total) — single lane-dense load
        k = k_ref[0]  # (tkv, E_total)
        v = v_ref[0]  # (tkv, E_total)

        # Causal mask (top-left aligned, matching F.sdpa(is_causal=True)), hoisted
        # out of the head loop.  Finite mask value -> no inf-inf NaNs ever.
        row = qi * tq + lax.broadcasted_iota(jnp.int32, (tq, tkv), 0)
        col = kv_start + lax.broadcasted_iota(jnp.int32, (tq, tkv), 1)
        causal = col <= row

        nt_dims = (((1,), (1,)), ((), ()))  # contract last dims: Q @ K^T with no transpose

        for h in range(nheads):  # short unrolled loop — LLO scheduler sees all of it
            sl = slice(h * e_head, (h + 1) * e_head)

            s = lax.dot_general(q[:, sl], k[:, sl], nt_dims,
                                preferred_element_type=jnp.float32)
            s = jnp.where(causal, s, _MASK_VALUE)

            m_prev = m_sc[:, h:h + 1]                                 # (tq, 1)
            m_new = jnp.maximum(m_prev, jnp.max(s, axis=-1, keepdims=True))
            alpha = jnp.exp(m_prev - m_new)                           # f32
            p = jnp.exp(s - m_new)                                    # (tq, tkv) f32

            l_sc[:, h:h + 1] = alpha * l_sc[:, h:h + 1] + jnp.sum(p, axis=-1, keepdims=True)
            acc_sc[:, sl] = alpha * acc_sc[:, sl] + jnp.dot(
                p.astype(v.dtype), v[:, sl], preferred_element_type=jnp.float32)
            m_sc[:, h:h + 1] = m_new

    @pl.when(ki == pl.num_programs(2) - 1)
    def _():
        # Deferred normalization; single lane-dense packed store (e_head < 128 here).
        outs = []
        for h in range(nheads):
            sl = slice(h * e_head, (h + 1) * e_head)
            inv = pl.reciprocal(l_sc[:, h:h + 1], approx=True)        # EUP, not VALU divide
            outs.append(acc_sc[:, sl] * inv)
        o_ref[0] = jnp.concatenate(outs, axis=-1).astype(o_ref.dtype)


def pallas_causal_mha(q, k, v, nheads):
    """q: (N, Lt, E_total); k, v: (N, Ls, E_total) -> (N, Lt, E_total), head-packed."""
    N, Lt, E_total = q.shape
    Ls = k.shape[1]
    e_head = E_total // nheads

    tq = _pick_tile(Lt, 256, 8)
    tkv = _pick_tile(Ls, 256, 8)

    kernel = functools.partial(_mha_flash_kernel, nheads=nheads, e_head=e_head)

    return pl.pallas_call(
        kernel,
        out_shape=jax.ShapeDtypeStruct((N, Lt, E_total), q.dtype),
        grid=(N, Lt // tq, Ls // tkv),
        in_specs=[
            pl.BlockSpec((1, tq, E_total), lambda b, i, j: (b, i, 0)),
            pl.BlockSpec((1, tkv, E_total), lambda b, i, j: (b, j, 0)),
            pl.BlockSpec((1, tkv, E_total), lambda b, i, j: (b, j, 0)),
        ],
        out_specs=pl.BlockSpec((1, tq, E_total), lambda b, i, j: (b, i, 0)),
        scratch_shapes=[
            pltpu.VMEM((tq, nheads), jnp.float32),   # running max per head
            pltpu.VMEM((tq, nheads), jnp.float32),   # running denom per head
            pltpu.VMEM((tq, E_total), jnp.float32),  # head-packed accumulator
        ],
        compiler_params=pltpu.CompilerParams(
            dimension_semantics=("parallel", "parallel", "arbitrary"),
            vmem_limit_bytes=_VMEM_LIMIT,
        ),
    )(q, k, v)


# ------------------------------ module forward -------------------------------


def init_params(key, E_q, E_k, E_v, E_total):
    """Params mirroring nn.Linear default init (uniform +-1/sqrt(fan_in))."""
    def linear_params(key, fan_in, fan_out):
        kw, kb = jax.random.split(key)
        bound = 1.0 / math.sqrt(fan_in)
        w = jax.random.uniform(kw, (fan_out, fan_in), jnp.float32, -bound, bound)
        b = jax.random.uniform(kb, (fan_out,), jnp.float32, -bound, bound)
        return w, b

    k1, k2, k3, k4 = jax.random.split(key, 4)
    E_out = E_q
    return {
        "query_proj": linear_params(k1, E_q, E_total),
        "key_proj": linear_params(k2, E_k, E_total),
        "value_proj": linear_params(k3, E_v, E_total),
        "out_proj": linear_params(k4, E_total, E_out),
    }


def multi_head_attention(params, query, key, value, nheads):
    """query: (N, Lt, E_q); key: (N, Ls, E_k); value: (N, Ls, E_v) -> (N, Lt, E_q)."""
    N, Lt, _ = query.shape
    Ls = key.shape[1]
    E_total = params["query_proj"][0].shape[0]
    E_head = E_total // nheads
    scale = 1.0 / math.sqrt(E_head)
    out_dtype = query.dtype

    # 1. Input projections (tiled bf16-MXU Pallas matmuls, f32 accumulation).  The
    #    1/sqrt(E_head) softmax scale is folded into the Q projection (free).  Projection
    #    outputs are bf16 so the attention kernel's K/V HBM + VMEM footprint is halved.
    wq, bq = params["query_proj"]
    q = pallas_linear(query.reshape(N * Lt, -1), wq * scale, bq * scale,
                      out_dtype=_COMPUTE_DTYPE).reshape(N, Lt, E_total)
    k = pallas_linear(key.reshape(N * Ls, -1), *params["key_proj"],
                      out_dtype=_COMPUTE_DTYPE).reshape(N, Ls, E_total)
    v = pallas_linear(value.reshape(N * Ls, -1), *params["value_proj"],
                      out_dtype=_COMPUTE_DTYPE).reshape(N, Ls, E_total)

    # 2+3. Flash-style causal SDPA on the head-packed layout (heads split inside the
    #      kernel) -> no split/merge-head transposes between pallas_calls.
    o = pallas_causal_mha(q, k, v, nheads)  # (N, Lt, E_total) bf16

    # 4. Output projection back to the input dtype.
    E_out = params["out_proj"][0].shape[0]
    out = pallas_linear(o.reshape(N * Lt, E_total), *params["out_proj"],
                        out_dtype=out_dtype).reshape(N, Lt, E_out)
    return out


# ----------------------------- pure-JAX reference -----------------------------


def reference_mha(params, query, key, value, nheads):
    def lin(x, w, b):
        return x @ w.T + b

    N, Lt, _ = query.shape
    Ls = key.shape[1]
    E_total = params["query_proj"][0].shape[0]
    E_head = E_total // nheads

    q = lin(query, *params["query_proj"]).reshape(N, Lt, nheads, E_head).transpose(0, 2, 1, 3)
    k = lin(key, *params["key_proj"]).reshape(N, Ls, nheads, E_head).transpose(0, 2, 1, 3)
    v = lin(value, *params["value_proj"]).reshape(N, Ls, nheads, E_head).transpose(0, 2, 1, 3)

    s = jnp.einsum("nhqd,nhkd->nhqk", q, k) / math.sqrt(E_head)
    mask = jnp.tril(jnp.ones((Lt, Ls), dtype=bool))
    s = jnp.where(mask, s, -jnp.inf)
    p = jax.nn.softmax(s, axis=-1)
    o = jnp.einsum("nhqk,nhkd->nhqd", p, v).transpose(0, 2, 1, 3).reshape(N, Lt, E_total)
    return lin(o, *params["out_proj"])


# ------------------------------------ main ------------------------------------


if __name__ == "__main__":
    nheads = 8
    N, Lt, Ls = 2, 8, 8
    E_q, E_k, E_v, E_total = 32, 32, 32, 64  # E_head = 8

    root = jax.random.PRNGKey(0)
    kp, kq, kk, kv = jax.random.split(root, 4)

    params = init_params(kp, E_q, E_k, E_v, E_total)
    query = jax.random.normal(kq, (N, Lt, E_q), jnp.float32)
    key = jax.random.normal(kk, (N, Ls, E_k), jnp.float32)
    value = jax.random.normal(kv, (N, Ls, E_v), jnp.float32)

    out = multi_head_attention(params, query, key, value, nheads)
    out = jax.block_until_ready(out)

    ref = reference_mha(params, query, key, value, nheads)
    # bf16 MXU inputs (f32 accumulation) vs an all-f32 reference -> loose tolerance.
    np.testing.assert_allclose(np.asarray(out), np.asarray(ref), atol=3e-2, rtol=3e-2)

    print("KERNEL_OK")
</pallas_src>

<mosaic_0001>
module attributes {stable_mosaic.version = 11 : i64} {
  func.func @_linear_kernel(%arg0: i32, %arg1: i32, %arg2: i32, %arg3: memref<16x32xbf16, #tpu.memory_space<vmem>>, %arg4: memref<64x32xbf16, #tpu.memory_space<vmem>>, %arg5: memref<1x64xf32, #tpu.memory_space<vmem>>, %arg6: memref<16x64xbf16, #tpu.memory_space<vmem>>, %arg7: memref<16x64xf32, #tpu.memory_space<vmem>>) attributes {dimension_semantics = [#tpu.dimension_semantics<parallel>, #tpu.dimension_semantics<parallel>, #tpu.dimension_semantics<arbitrary>], iteration_bounds = array<i64: 1, 1, 1>, scalar_prefetch = 0 : i64, scratch_operands = 1 : i64, tpu.core_type = #tpu.core_type<tc>, window_params = [{transform_indices = @transform_0, window_bounds = array<i64: 16, 32>}, {transform_indices = @transform_1, window_bounds = array<i64: 64, 32>}, {transform_indices = @transform_2, window_bounds = array<i64: 1, 64>}, {transform_indices = @transform_3, window_bounds = array<i64: 16, 64>}]} {
    %c0_i32 = arith.constant 0 : i32
    %0 = arith.cmpi eq, %arg2, %c0_i32 : i32
    %1 = arith.extui %0 : i1 to i32
    %c0_i32_0 = arith.constant 0 : i32
    %2 = arith.cmpi ne, %1, %c0_i32_0 : i32
    scf.if %2 {
      %cst_10 = arith.constant 0.000000e+00 : f32
      %12 = vector.broadcast %cst_10 : f32 to vector<16x64xf32>
      %c0_11 = arith.constant 0 : index
      %c0_12 = arith.constant 0 : index
      %13 = vector.load %arg7[%c0_11, %c0_12] : memref<16x64xf32, #tpu.memory_space<vmem>>, vector<16x64xf32>
      tpu.vector_store %arg7[%c0_11, %c0_12], %12 {strides = array<i32>} : memref<16x64xf32, #tpu.memory_space<vmem>>, vector<16x64xf32>,
    } else {
    }
    %c0 = arith.constant 0 : index
    %c0_1 = arith.constant 0 : index
    %3 = vector.load %arg7[%c0, %c0_1] : memref<16x64xf32, #tpu.memory_space<vmem>>, vector<16x64xf32>
    %c0_2 = arith.constant 0 : index
    %c0_3 = arith.constant 0 : index
    %4 = vector.load %arg3[%c0_2, %c0_3] : memref<16x32xbf16, #tpu.memory_space<vmem>>, vector<16x32xbf16>
    %c0_4 = arith.constant 0 : index
    %c0_5 = arith.constant 0 : index
    %5 = vector.load %arg4[%c0_4, %c0_5] : memref<64x32xbf16, #tpu.memory_space<vmem>>, vector<64x32xbf16>
    %cst = arith.constant dense<0.000000e+00> : vector<16x64xf32>
    %6 = tpu.matmul %4, %5, %cst {dimension_numbers = #tpu.dot_dimension_numbers<[1], [1], [0], [0], [0, 0, 1, 0], [], []>} : vector<16x32xbf16>, vector<64x32xbf16>, vector<16x64xf32> -> vector<16x64xf32>
    %7 = arith.addf %3, %6 : vector<16x64xf32>
    %c0_6 = arith.constant 0 : index
    %c0_7 = arith.constant 0 : index
    %8 = vector.load %arg7[%c0_6, %c0_7] : memref<16x64xf32, #tpu.memory_space<vmem>>, vector<16x64xf32>
    tpu.vector_store %arg7[%c0_6, %c0_7], %7 {strides = array<i32>} : memref<16x64xf32, #tpu.memory_space<vmem>>, vector<16x64xf32>,
    %c0_i32_8 = arith.constant 0 : i32
    %9 = arith.cmpi eq, %arg2, %c0_i32_8 : i32
    %10 = arith.extui %9 : i1 to i32
    %c0_i32_9 = arith.constant 0 : i32
    %11 = arith.cmpi ne, %10, %c0_i32_9 : i32
    scf.if %11 {
      %c0_10 = arith.constant 0 : index
      %c0_11 = arith.constant 0 : index
      %12 = vector.load %arg7[%c0_10, %c0_11] : memref<16x64xf32, #tpu.memory_space<vmem>>, vector<16x64xf32>
      %c0_12 = arith.constant 0 : index
      %c0_13 = arith.constant 0 : index
      %13 = vector.load %arg5[%c0_12, %c0_13] : memref<1x64xf32, #tpu.memory_space<vmem>>, vector<1x64xf32>
      %14 = vector.broadcast %13 : vector<1x64xf32> to vector<16x64xf32>
      %15 = arith.addf %12, %14 : vector<16x64xf32>
      %16 = arith.truncf %15 : vector<16x64xf32> to vector<16x64xbf16>
      %c0_14 = arith.constant 0 : index
      %c0_15 = arith.constant 0 : index
      %17 = vector.load %arg6[%c0_14, %c0_15] : memref<16x64xbf16, #tpu.memory_space<vmem>>, vector<16x64xbf16>
      tpu.vector_store %arg6[%c0_14, %c0_15], %16 {strides = array<i32>} : memref<16x64xbf16, #tpu.memory_space<vmem>>, vector<16x64xbf16>,
    } else {
    }
    return
  }
  func.func @transform_0(%arg0: i32, %arg1: i32, %arg2: i32) -> (i32, i32) {
    %c0_i32 = arith.constant 0 : i32
    return %arg0, %arg2 : i32, i32
  }
  func.func @transform_1(%arg0: i32, %arg1: i32, %arg2: i32) -> (i32, i32) {
    %c0_i32 = arith.constant 0 : i32
    return %arg1, %arg2 : i32, i32
  }
  func.func @transform_2(%arg0: i32, %arg1: i32, %arg2: i32) -> (i32, i32) {
    %c0_i32 = arith.constant 0 : i32
    %c0_i32_0 = arith.constant 0 : i32
    return %c0_i32, %arg1 : i32, i32
  }
  func.func @transform_3(%arg0: i32, %arg1: i32, %arg2: i32) -> (i32, i32) {
    %c0_i32 = arith.constant 0 : i32
    return %arg0, %arg1 : i32, i32
  }
}

</mosaic_0001>

<bundles_post_ra>
// kernel: tpu_custom_call.1
= control target key start
LH: loop header
LB: loop body
LE: loop exit
PB: predicated region body
PF: predicated region fallthrough
CT: control target
= control target key end

     0   :  { %v223_v1 = vmov 0.0   ;;  %vm60_vm0 = vcmask 261120   ;;  %vm224_vm1 = vmmov 0   ;;  %vm20_vm2 = vcmask 523264   ;;  %s278_s0 = inlined_call_operand.vmem [shape: bf16[16,32], index: 0, kind: input, shape index: {}]   ;;  %s279_s1 = inlined_call_operand.vmem [shape: bf16[64,32], index: 1, kind: input, shape index: {}]   ;;  %s280_s2 = inlined_call_operand.vmem [shape: f32[1,64], index: 2, kind: input, shape index: {}]   ;;  %s281_s3 = inlined_call_operand.hbm [shape: bf16[16,64], index: 3, kind: output, shape index: {}]  }
   0x1   :  { %v196_v0 = vld [vmem:[%s279_s1 + $0x18] sm:$0xff]   ;;  %179 = vmatprep.subr.bf16.mxu0 %v223_v1  ;;  %v197_v3 = vld [vmem:[%s279_s1 + $0x10] sm:$0xff]   ;;  %187 = vmatprep.mubr.msk.bf16.mxu0 %vm224_vm1, %v223_v1 }
   0x2   :  { %v74_v2 = vsel %vm60_vm0, %v196_v0, 0 }
   0x3   :  { %180 = vmatpush3.bf16.xpose.msra.mxu0 %v74_v2 }
   0x4   :  { %181 = vmatprep.subr.bf16.mxu0 %v223_v1 }
   0x5   :  { %8 = vsyncpa [#allocation4], 0  ;;  %21 = vst.msk [vmem:[#allocation2] sm:$0xff] %vm20_vm2, %v223_v1  ;;  %v71_v4 = vsel %vm60_vm0, %v197_v3, 0  ;;  %v198_v5 = vld [vmem:[%s279_s1 + $0x8] sm:$0xff]   ;;  %v199_v7 = vld [vmem:[%s279_s1] sm:$0xff]  }
   0x6   :  { %22 = vst.msk [vmem:[#allocation2 + $0x8] sm:$0xff] %vm20_vm2, %v223_v1  ;;  %v68_v6 = vsel %vm60_vm0, %v198_v5, 0  ;;  %v65_v8 = vsel %vm60_vm0, %v199_v7, 0  ;;  %v200_v9 = vld [vmem:[%s278_s0] sm:$0xff]   ;;  %vm144_vm3 = vcmask 519168   ;;  %s225_s0 = smov [#allocation3]  }
   0x7   :  { %v169_v18 = vld [vmem:[%s280_s2] ss:$0 sm:$0xff]  ;;  %s152_s23 = sshll.u32 %s225_s0, 4  ;;  %s153_s23 = int_to_ptr.vmem [resolvable:$true] %s152_s23 }
   0x8   :  { %s201_s24 = scalar_lea.vmem %s153_s23, 128  ;;  %p206_p1 = scmp.lt.s32.totalorder %s153_s23, %s153_s23 }
   0x9   :  { %p202_p0 = scmp.ne.s32.totalorder %s153_s23, %s201_s24  ;;  %p207_p2 = scmp.lt.s32.totalorder %s201_s24, %s201_s24 }
   0xb   :  { %182 = vmatpush3.bf16.xpose.msra.mxu0 %v71_v4  ;;  %p208_p3 = por %p207_p2, %p206_p1 }
   0xc   :  { %183 = vmatprep.subr.bf16.mxu0 %v223_v1  ;;  %v23_v10 = vld [vmem:[#allocation2] sm:$0xff] }
   0xd   :  { %v24_v14 = vld [vmem:[#allocation2 + $0x8] sm:$0xff]  ;;  %p209_p4 = pnand %p208_p3, %p202_p0 }
  0x13   :  { %184 = vmatpush3.bf16.xpose.msra.mxu0 %v68_v6 }
  0x14   :  { %185 = vmatprep.subr.bf16.mxu0 %v223_v1 }
  0x1b   :  { %186 = vmatpush3.bf16.xpose.msra.mxu0 %v65_v8 }
  0x22   :  { %188 = vmatmul.mubr.msk.bf16.vlgmr.msra.gmra.mxu0 %vm60_vm0, %v200_v9 }
  0xe2   :  { %v110_v11 = vpop.f32.mrf.mxu0 }
  0xe3   :  { %v117_v12 = vadd.f32 %v110_v11, %v23_v10 }
  0xe4   :  { %v189_v13 = vpop.f32.mrf.mxu0 }
  0xe5   :  { %120 = vst.msk [vmem:[#allocation2] sm:$0xff] %vm20_vm2, %v117_v12 }
  0xe6   :  { %v113_v15 = vpop.f32.mrf.mxu0 }
  0xe7   :  { %v118_v16 = vadd.f32 %v113_v15, %v24_v14 }
  0xe8   :  { %v190_v17 = vpop.f32.mrf.mxu0 }
  0xe9   :  { %121 = vst.msk [vmem:[#allocation2 + $0x8] sm:$0xff] %vm20_vm2, %v118_v16 }
  0xec   :  { %v125_v19 = vld [vmem:[#allocation2] sm:$0xff] }
  0xed   :  { %v134_v20 = vadd.f32 %v169_v18, %v125_v19 }
  0xef   :  { %v172_v21 = vpack.c.bf16 %v134_v20, %v134_v20 }
  0xf0   :  { %v126_v22 = vld [vmem:[#allocation2 + $0x8] sm:$0xff] }
  0xf1   :  { %v135_v23 = vadd.f32 %v169_v18, %v126_v22  ;;  %145 = vst.msk [vmem:[#allocation3] sm:$0xf] %vm144_vm3, %v172_v21 }
  0xf3   :  { %v173_v24 = vpack.c.bf16 %v135_v23, %v135_v23 }
  0xf5   :  { %146 = vst.msk [vmem:[#allocation3 + $0x4] sm:$0xf] %vm144_vm3, %v173_v24 }
  0xf6   :  { %212 = shalt.err (!%p209_p4)
}
  0xf7   :  { %s226_s2 = smov 64   ;;  %s227_s25 = smov 4  }
  0xf8   :  { %158 = dma.vmem_to_hbm [thread:$0]  %s153_s23, 128, %s281_s3, [#allocation4], %s226_s2, %s226_s2, %s227_s25  }
  0xf9   :  { %221 = dma.done.wait [#allocation4], 128  }
  0xfa   :  { %222 = vsyncadd [#allocation4], 4294967168 }
  0xfb   :  { %162 = vsyncpa [#allocation4], 1 }

</bundles_post_ra>
